<compile_context>
chip_gen: v5e
topology: v5e:2x2
jax: 0.10.0
libtpu: 0.0.40
codegen_flags: <defaults>
</compile_context>

<pallas_src>
import functools

import jax
import jax.numpy as jnp
from jax.experimental import pallas as pl
from jax.experimental.pallas import tpu as pltpu

LANE = 128
SUBLANE = 8
BASE = SUBLANE * LANE  # 1024 — minimum batch tile (one full f32 vreg)

# Packed parameter layout inside the (22,) SMEM vector:
#   [0:3)   w1  (3 hidden weights, fan_in = 1)            -> w1[j]
#   [3:6)   b1  (3 hidden biases)                          -> b1[j]
#   [6:18)  w2  row-major (4 out x 3 in)                   -> w2[k, j] = 6 + 3*k + j
#   [18:22) b2  (4 output biases)                          -> b2[k]
_W1, _B1, _W2, _B2 = 0, 3, 6, 18


def generator_kernel(params_ref, x_ref, o_ref):
    """params_ref: SMEM (22,) f32.  x_ref: (8, tn) packed batch.  o_ref: (4, 8, tn)."""
    x = x_ref[...]                                                    # (8, tn) full vregs

    # Layer 1: Linear(1,3) + Sigmoid == per-hidden-unit broadcast FMA (VPU) + EUP sigmoid.
    h = [jax.nn.sigmoid(params_ref[_W1 + j] * x + params_ref[_B1 + j])
         for j in range(3)]

    # Layer 2: Linear(3,4) + Sigmoid == 3 unrolled broadcast FMAs per output row,
    # each row stored directly (unmasked lane-dense vst, no concat/XLU shuffle).
    for k in range(4):
        acc = params_ref[_B2 + k] + params_ref[_W2 + 3 * k + 0] * h[0]
        acc = acc + params_ref[_W2 + 3 * k + 1] * h[1]
        acc = acc + params_ref[_W2 + 3 * k + 2] * h[2]
        o_ref[k] = jax.nn.sigmoid(acc)                                # (8, tn)


def _pick_tile(B, b_tile):
    """Batch tile: multiple of 8*128, amortizes per-step overhead, >=2 grid steps
    when the batch allows it (v7x 2-TC sharding), bounded for VMEM."""
    b_pad_min = pl.cdiv(B, BASE) * BASE
    if b_pad_min >= 2 * BASE:
        # leave at least 2 tiles on the "parallel" axis
        b_tile = min(b_tile, (b_pad_min // (2 * BASE)) * BASE)
    b_tile = max(BASE, (min(b_tile, b_pad_min) // BASE) * BASE)
    b_pad = pl.cdiv(B, b_tile) * b_tile
    return b_tile, b_pad


def _generator_call(params, x_packed, b_tile):
    """params: (22,) f32.  x_packed: (8, b_pad//8) f32.  Returns (4, 8, b_pad//8) f32."""
    b_pad = x_packed.shape[1] * SUBLANE
    tn = b_tile // SUBLANE
    n_tiles = b_pad // b_tile

    # x tile + out tile, f32, double-buffered — explicit VMEM budget with headroom.
    bytes_per_step = b_tile * 4 * (1 + 4)
    vmem_limit = int(min(max(32 << 20, 3 * bytes_per_step), 64 << 20))

    return pl.pallas_call(
        generator_kernel,
        out_shape=jax.ShapeDtypeStruct((4, SUBLANE, b_pad // SUBLANE), jnp.float32),
        grid=(n_tiles,),
        in_specs=[
            pl.BlockSpec(memory_space=pltpu.MemorySpace.SMEM),        # packed params (grid-invariant)
            pl.BlockSpec((SUBLANE, tn), lambda i: (0, i)),            # lane-dense x tile
        ],
        out_specs=pl.BlockSpec((4, SUBLANE, tn), lambda i: (0, 0, i)),  # lane-dense row stores
        compiler_params=pltpu.CompilerParams(
            dimension_semantics=("parallel",),                        # batch tiles independent
            vmem_limit_bytes=vmem_limit),
    )(params, x_packed)


@functools.partial(jax.jit, static_argnames=("b_tile",))
def generator_forward(x, w1, b1, w2, b2, *, b_tile=256 * 1024):
    """x: (B, 1) f32. w1: (3,1), b1: (3,), w2: (4,3), b2: (4,) — PyTorch nn.Linear layout.
    Returns (B, 4) f32 == sigmoid(sigmoid(x @ w1.T + b1) @ w2.T + b2).

    Note: the pack/unpack around the kernel is convenience for the (B, 4)
    interface; latency-critical consumers should feed/consume the lane-major
    (8, N) / (4, 8, N) layout directly via _generator_call to avoid the extra
    HBM round-trips (jit fuses them here, but they are still separate XLA ops).
    """
    B = x.shape[0]
    b_tile, b_pad = _pick_tile(B, b_tile)

    # Pack every parameter scalar into one small vector -> single SMEM operand.
    params = jnp.concatenate(
        [w1.reshape(-1), b1.reshape(-1), w2.reshape(-1), b2.reshape(-1)]
    ).astype(jnp.float32)                                             # (22,)

    # Pack the batch onto full (8, lane) vregs; zero-pad to b_pad elements.
    x_flat = x.reshape(-1).astype(jnp.float32)
    x_packed = (jnp.zeros((b_pad,), jnp.float32).at[:B].set(x_flat)
                .reshape(SUBLANE, b_pad // SUBLANE))

    out_packed = _generator_call(params, x_packed, b_tile)            # (4, 8, b_pad//8)

    # Invert the packing: (4, 8, N) -> (4, b_pad) -> (B, 4).
    return out_packed.reshape(4, b_pad).T[:B]


def init_params(key):
    """Deterministic init mimicking torch.nn.Linear default U[-1/sqrt(fan_in), 1/sqrt(fan_in)]."""
    k1, k2, k3, k4 = jax.random.split(key, 4)
    bound1 = 1.0 / jnp.sqrt(1.0)   # fan_in = 1
    bound2 = 1.0 / jnp.sqrt(3.0)   # fan_in = 3
    w1 = jax.random.uniform(k1, (3, 1), jnp.float32, -bound1, bound1)
    b1 = jax.random.uniform(k2, (3,), jnp.float32, -bound1, bound1)
    w2 = jax.random.uniform(k3, (4, 3), jnp.float32, -bound2, bound2)
    b2 = jax.random.uniform(k4, (4,), jnp.float32, -bound2, bound2)
    return w1, b1, w2, b2


def reference_forward(x, w1, b1, w2, b2):
    h = jax.nn.sigmoid(x @ w1.T + b1)
    return jax.nn.sigmoid(h @ w2.T + b2)


# TODO(synk): trainG (SGD/MSELoss training step vs. a discriminator) and
# queryLoss (matplotlib plotting) are training/IO utilities, not part of the
# forward pass, and are intentionally not implemented as kernels.

if __name__ == "__main__":
    key = jax.random.PRNGKey(0)
    kx, kp = jax.random.split(key)

    w1, b1, w2, b2 = init_params(kp)

    # Small batch (single 1024-element tile, mostly padding).
    B = 8
    x = jax.random.normal(kx, (B, 1), jnp.float32)
    out = jax.block_until_ready(generator_forward(x, w1, b1, w2, b2))
    ref = reference_forward(x, w1, b1, w2, b2)
    assert out.shape == (B, 4)
    assert jnp.allclose(out, ref, atol=1e-5, rtol=1e-5)

    # Larger batch exercising the multi-tile "parallel" grid path + padding.
    B2 = 3000
    x2 = jax.random.normal(kx, (B2, 1), jnp.float32)
    out2 = jax.block_until_ready(generator_forward(x2, w1, b1, w2, b2))
    ref2 = reference_forward(x2, w1, b1, w2, b2)
    assert out2.shape == (B2, 4)
    assert jnp.allclose(out2, ref2, atol=1e-5, rtol=1e-5)

    print("KERNEL_OK")
</pallas_src>

<mosaic_0001>
module attributes {stable_mosaic.version = 11 : i64} {
  func.func @generator_kernel(%arg0: i32, %arg1: memref<22xf32, #tpu.memory_space<smem>>, %arg2: memref<8x128xf32, #tpu.memory_space<vmem>>, %arg3: memref<4x8x128xf32, #tpu.memory_space<vmem>>) attributes {dimension_semantics = [#tpu.dimension_semantics<parallel>], iteration_bounds = array<i64: 1>, scalar_prefetch = 0 : i64, scratch_operands = 0 : i64, tpu.core_type = #tpu.core_type<tc>, window_params = [{transform_indices = @transform_0, window_bounds = array<i64: 22>}, {transform_indices = @transform_1, window_bounds = array<i64: 8, 128>}, {transform_indices = @transform_2, window_bounds = array<i64: 4, 8, 128>}]} {
    %c0 = arith.constant 0 : index
    %c0_0 = arith.constant 0 : index
    %0 = vector.load %arg2[%c0, %c0_0] : memref<8x128xf32, #tpu.memory_space<vmem>>, vector<8x128xf32>
    %c0_1 = arith.constant 0 : index
    %1 = memref.load %arg1[%c0_1] : memref<22xf32, #tpu.memory_space<smem>>
    %2 = vector.broadcast %1 : f32 to vector<8x128xf32>
    %3 = arith.mulf %2, %0 : vector<8x128xf32>
    %c3 = arith.constant 3 : index
    %4 = memref.load %arg1[%c3] : memref<22xf32, #tpu.memory_space<smem>>
    %5 = vector.broadcast %4 : f32 to vector<8x128xf32>
    %6 = arith.addf %3, %5 : vector<8x128xf32>
    %7 = arith.negf %6 : vector<8x128xf32>
    %8 = math.exp %7 : vector<8x128xf32>
    %cst = arith.constant 1.000000e+00 : f32
    %9 = vector.broadcast %cst : f32 to vector<8x128xf32>
    %10 = arith.addf %9, %8 : vector<8x128xf32>
    %11 = arith.divf %9, %10 : vector<8x128xf32>
    %c1 = arith.constant 1 : index
    %12 = memref.load %arg1[%c1] : memref<22xf32, #tpu.memory_space<smem>>
    %13 = vector.broadcast %12 : f32 to vector<8x128xf32>
    %14 = arith.mulf %13, %0 : vector<8x128xf32>
    %c4 = arith.constant 4 : index
    %15 = memref.load %arg1[%c4] : memref<22xf32, #tpu.memory_space<smem>>
    %16 = vector.broadcast %15 : f32 to vector<8x128xf32>
    %17 = arith.addf %14, %16 : vector<8x128xf32>
    %18 = arith.negf %17 : vector<8x128xf32>
    %19 = math.exp %18 : vector<8x128xf32>
    %cst_2 = arith.constant 1.000000e+00 : f32
    %20 = vector.broadcast %cst_2 : f32 to vector<8x128xf32>
    %21 = arith.addf %20, %19 : vector<8x128xf32>
    %22 = arith.divf %20, %21 : vector<8x128xf32>
    %c2 = arith.constant 2 : index
    %23 = memref.load %arg1[%c2] : memref<22xf32, #tpu.memory_space<smem>>
    %24 = vector.broadcast %23 : f32 to vector<8x128xf32>
    %25 = arith.mulf %24, %0 : vector<8x128xf32>
    %c5 = arith.constant 5 : index
    %26 = memref.load %arg1[%c5] : memref<22xf32, #tpu.memory_space<smem>>
    %27 = vector.broadcast %26 : f32 to vector<8x128xf32>
    %28 = arith.addf %25, %27 : vector<8x128xf32>
    %29 = arith.negf %28 : vector<8x128xf32>
    %30 = math.exp %29 : vector<8x128xf32>
    %cst_3 = arith.constant 1.000000e+00 : f32
    %31 = vector.broadcast %cst_3 : f32 to vector<8x128xf32>
    %32 = arith.addf %31, %30 : vector<8x128xf32>
    %33 = arith.divf %31, %32 : vector<8x128xf32>
    %c18 = arith.constant 18 : index
    %34 = memref.load %arg1[%c18] : memref<22xf32, #tpu.memory_space<smem>>
    %c6 = arith.constant 6 : index
    %35 = memref.load %arg1[%c6] : memref<22xf32, #tpu.memory_space<smem>>
    %36 = vector.broadcast %35 : f32 to vector<8x128xf32>
    %37 = arith.mulf %36, %11 : vector<8x128xf32>
    %38 = vector.broadcast %34 : f32 to vector<8x128xf32>
    %39 = arith.addf %38, %37 : vector<8x128xf32>
    %c7 = arith.constant 7 : index
    %40 = memref.load %arg1[%c7] : memref<22xf32, #tpu.memory_space<smem>>
    %41 = vector.broadcast %40 : f32 to vector<8x128xf32>
    %42 = arith.mulf %41, %22 : vector<8x128xf32>
    %43 = arith.addf %39, %42 : vector<8x128xf32>
    %c8 = arith.constant 8 : index
    %44 = memref.load %arg1[%c8] : memref<22xf32, #tpu.memory_space<smem>>
    %45 = vector.broadcast %44 : f32 to vector<8x128xf32>
    %46 = arith.mulf %45, %33 : vector<8x128xf32>
    %47 = arith.addf %43, %46 : vector<8x128xf32>
    %48 = arith.negf %47 : vector<8x128xf32>
    %49 = math.exp %48 : vector<8x128xf32>
    %cst_4 = arith.constant 1.000000e+00 : f32
    %50 = vector.broadcast %cst_4 : f32 to vector<8x128xf32>
    %51 = arith.addf %50, %49 : vector<8x128xf32>
    %52 = arith.divf %50, %51 : vector<8x128xf32>
    %c0_5 = arith.constant 0 : index
    %c0_6 = arith.constant 0 : index
    %c0_7 = arith.constant 0 : index
    %53 = vector.load %arg3[%c0_5, %c0_6, %c0_7] : memref<4x8x128xf32, #tpu.memory_space<vmem>>, vector<1x8x128xf32>
    %54 = vector.shape_cast %53 : vector<1x8x128xf32> to vector<8x128xf32>
    %55 = vector.shape_cast %52 : vector<8x128xf32> to vector<1x8x128xf32>
    tpu.vector_store %arg3[%c0_5, %c0_6, %c0_7], %55 {strides = array<i32>} : memref<4x8x128xf32, #tpu.memory_space<vmem>>, vector<1x8x128xf32>,
    %c19 = arith.constant 19 : index
    %56 = memref.load %arg1[%c19] : memref<22xf32, #tpu.memory_space<smem>>
    %c9 = arith.constant 9 : index
    %57 = memref.load %arg1[%c9] : memref<22xf32, #tpu.memory_space<smem>>
    %58 = vector.broadcast %57 : f32 to vector<8x128xf32>
    %59 = arith.mulf %58, %11 : vector<8x128xf32>
    %60 = vector.broadcast %56 : f32 to vector<8x128xf32>
    %61 = arith.addf %60, %59 : vector<8x128xf32>
    %c10 = arith.constant 10 : index
    %62 = memref.load %arg1[%c10] : memref<22xf32, #tpu.memory_space<smem>>
    %63 = vector.broadcast %62 : f32 to vector<8x128xf32>
    %64 = arith.mulf %63, %22 : vector<8x128xf32>
    %65 = arith.addf %61, %64 : vector<8x128xf32>
    %c11 = arith.constant 11 : index
    %66 = memref.load %arg1[%c11] : memref<22xf32, #tpu.memory_space<smem>>
    %67 = vector.broadcast %66 : f32 to vector<8x128xf32>
    %68 = arith.mulf %67, %33 : vector<8x128xf32>
    %69 = arith.addf %65, %68 : vector<8x128xf32>
    %70 = arith.negf %69 : vector<8x128xf32>
    %71 = math.exp %70 : vector<8x128xf32>
    %cst_8 = arith.constant 1.000000e+00 : f32
    %72 = vector.broadcast %cst_8 : f32 to vector<8x128xf32>
    %73 = arith.addf %72, %71 : vector<8x128xf32>
    %74 = arith.divf %72, %73 : vector<8x128xf32>
    %c1_9 = arith.constant 1 : index
    %c0_10 = arith.constant 0 : index
    %c0_11 = arith.constant 0 : index
    %75 = vector.load %arg3[%c1_9, %c0_10, %c0_11] : memref<4x8x128xf32, #tpu.memory_space<vmem>>, vector<1x8x128xf32>
    %76 = vector.shape_cast %75 : vector<1x8x128xf32> to vector<8x128xf32>
    %77 = vector.shape_cast %74 : vector<8x128xf32> to vector<1x8x128xf32>
    tpu.vector_store %arg3[%c1_9, %c0_10, %c0_11], %77 {strides = array<i32>} : memref<4x8x128xf32, #tpu.memory_space<vmem>>, vector<1x8x128xf32>,
    %c20 = arith.constant 20 : index
    %78 = memref.load %arg1[%c20] : memref<22xf32, #tpu.memory_space<smem>>
    %c12 = arith.constant 12 : index
    %79 = memref.load %arg1[%c12] : memref<22xf32, #tpu.memory_space<smem>>
    %80 = vector.broadcast %79 : f32 to vector<8x128xf32>
    %81 = arith.mulf %80, %11 : vector<8x128xf32>
    %82 = vector.broadcast %78 : f32 to vector<8x128xf32>
    %83 = arith.addf %82, %81 : vector<8x128xf32>
    %c13 = arith.constant 13 : index
    %84 = memref.load %arg1[%c13] : memref<22xf32, #tpu.memory_space<smem>>
    %85 = vector.broadcast %84 : f32 to vector<8x128xf32>
    %86 = arith.mulf %85, %22 : vector<8x128xf32>
    %87 = arith.addf %83, %86 : vector<8x128xf32>
    %c14 = arith.constant 14 : index
    %88 = memref.load %arg1[%c14] : memref<22xf32, #tpu.memory_space<smem>>
    %89 = vector.broadcast %88 : f32 to vector<8x128xf32>
    %90 = arith.mulf %89, %33 : vector<8x128xf32>
    %91 = arith.addf %87, %90 : vector<8x128xf32>
    %92 = arith.negf %91 : vector<8x128xf32>
    %93 = math.exp %92 : vector<8x128xf32>
    %cst_12 = arith.constant 1.000000e+00 : f32
    %94 = vector.broadcast %cst_12 : f32 to vector<8x128xf32>
    %95 = arith.addf %94, %93 : vector<8x128xf32>
    %96 = arith.divf %94, %95 : vector<8x128xf32>
    %c2_13 = arith.constant 2 : index
    %c0_14 = arith.constant 0 : index
    %c0_15 = arith.constant 0 : index
    %97 = vector.load %arg3[%c2_13, %c0_14, %c0_15] : memref<4x8x128xf32, #tpu.memory_space<vmem>>, vector<1x8x128xf32>
    %98 = vector.shape_cast %97 : vector<1x8x128xf32> to vector<8x128xf32>
    %99 = vector.shape_cast %96 : vector<8x128xf32> to vector<1x8x128xf32>
    tpu.vector_store %arg3[%c2_13, %c0_14, %c0_15], %99 {strides = array<i32>} : memref<4x8x128xf32, #tpu.memory_space<vmem>>, vector<1x8x128xf32>,
    %c21 = arith.constant 21 : index
    %100 = memref.load %arg1[%c21] : memref<22xf32, #tpu.memory_space<smem>>
    %c15 = arith.constant 15 : index
    %101 = memref.load %arg1[%c15] : memref<22xf32, #tpu.memory_space<smem>>
    %102 = vector.broadcast %101 : f32 to vector<8x128xf32>
    %103 = arith.mulf %102, %11 : vector<8x128xf32>
    %104 = vector.broadcast %100 : f32 to vector<8x128xf32>
    %105 = arith.addf %104, %103 : vector<8x128xf32>
    %c16 = arith.constant 16 : index
    %106 = memref.load %arg1[%c16] : memref<22xf32, #tpu.memory_space<smem>>
    %107 = vector.broadcast %106 : f32 to vector<8x128xf32>
    %108 = arith.mulf %107, %22 : vector<8x128xf32>
    %109 = arith.addf %105, %108 : vector<8x128xf32>
    %c17 = arith.constant 17 : index
    %110 = memref.load %arg1[%c17] : memref<22xf32, #tpu.memory_space<smem>>
    %111 = vector.broadcast %110 : f32 to vector<8x128xf32>
    %112 = arith.mulf %111, %33 : vector<8x128xf32>
    %113 = arith.addf %109, %112 : vector<8x128xf32>
    %114 = arith.negf %113 : vector<8x128xf32>
    %115 = math.exp %114 : vector<8x128xf32>
    %cst_16 = arith.constant 1.000000e+00 : f32
    %116 = vector.broadcast %cst_16 : f32 to vector<8x128xf32>
    %117 = arith.addf %116, %115 : vector<8x128xf32>
    %118 = arith.divf %116, %117 : vector<8x128xf32>
    %c3_17 = arith.constant 3 : index
    %c0_18 = arith.constant 0 : index
    %c0_19 = arith.constant 0 : index
    %119 = vector.load %arg3[%c3_17, %c0_18, %c0_19] : memref<4x8x128xf32, #tpu.memory_space<vmem>>, vector<1x8x128xf32>
    %120 = vector.shape_cast %119 : vector<1x8x128xf32> to vector<8x128xf32>
    %121 = vector.shape_cast %118 : vector<8x128xf32> to vector<1x8x128xf32>
    tpu.vector_store %arg3[%c3_17, %c0_18, %c0_19], %121 {strides = array<i32>} : memref<4x8x128xf32, #tpu.memory_space<vmem>>, vector<1x8x128xf32>,
    return
  }
  func.func @transform_0(%arg0: i32) -> i32 {
    %c0_i32 = arith.constant 0 : i32
    %c0_i32_0 = arith.constant 0 : i32
    return %c0_i32 : i32
  }
  func.func @transform_1(%arg0: i32) -> (i32, i32) {
    %c0_i32 = arith.constant 0 : i32
    %c0_i32_0 = arith.constant 0 : i32
    return %c0_i32, %arg0 : i32, i32
  }
  func.func @transform_2(%arg0: i32) -> (i32, i32, i32) {
    %c0_i32 = arith.constant 0 : i32
    %c0_i32_0 = arith.constant 0 : i32
    %c0_i32_1 = arith.constant 0 : i32
    return %c0_i32, %c0_i32_0, %arg0 : i32, i32, i32
  }
}

</mosaic_0001>

<bundles_post_ra>
// kernel: generator_forward.1
= control target key start
LH: loop header
LB: loop body
LE: loop exit
PB: predicated region body
PF: predicated region fallthrough
CT: control target
= control target key end

     0   :  { %7 = vsyncpa [#allocation3], 0  ;;  %s318_s12 = smov [#allocation2]   ;;  %s465_s0 = inlined_call_operand.vmem [shape: f32[22], index: 0, kind: input, shape index: {}]   ;;  %s466_s1 = inlined_call_operand.vmem [shape: f32[8,128], index: 1, kind: input, shape index: {}]   ;;  %s467_s2 = inlined_call_operand.vmem [shape: f32[4,8,128], index: 2, kind: output, shape index: {}]  }
   0x1   :  { %s13_s11 = sshll.u32 %s465_s0, 4  ;;  %s14_s11 = int_to_ptr.vmem [resolvable:$true] %s13_s11 }
   0x2   :  { %16 = dma.vmem_to_smem %s14_s11, 16, %s318_s12, [#allocation3]  }
   0x3   :  { %316 = dma.done.wait [#allocation3], 16  }
   0x4   :  { %317 = vsyncadd [#allocation3], 4294967280 }
   0x5   :  { %23 = sfence }
   0x6   :  { %s25_s13 = sld [smem:[#allocation2]]  ;;  %v24_v0 = vld [vmem:[%s466_s1] sm:$0xff] }
   0x7   :  { %s244_s14 = sld [smem:[#allocation2 + $0x3]] }
   0x8   :  { %s246_s15 = sld [smem:[#allocation2 + $0x1]] }
   0x9   :  { %s247_s16 = sld [smem:[#allocation2 + $0x4]] }
   0xa   :  { %s249_s19 = sld [smem:[#allocation2 + $0x2]] }
   0xb   :  { %s250_s20 = sld [smem:[#allocation2 + $0x5]] }
   0xc   :  { %v26_v1 = vstv %s25_s13  ;;  %s340_s0 = sld [smem:[#allocation2 + $0x12]] }
   0xd   :  { %v27_v2 = vmul.f32 %v26_v1, %v24_v0  ;;  %v29_v3 = vstv %s244_s14  ;;  %s342_s1 = sld [smem:[#allocation2 + $0x6]] }
   0xe   :  { %v51_v4 = vstv %s246_s15  ;;  %s344_s21 = sld [smem:[#allocation2 + $0x7]] }
   0xf   :  { %v30_v5 = vadd.f32 %v29_v3, %v27_v2  ;;  %v52_v6 = vmul.f32 %v51_v4, %v24_v0  ;;  %v54_v7 = vstv %s247_s16  ;;  %s346_s22 = sld [smem:[#allocation2 + $0x8]] }
  0x10   :  { %v76_v8 = vstv %s249_s19  ;;  %s348_s23 = sld [smem:[#allocation2 + $0x13]] }
  0x11   :  { %v245_v9 = vmul.f32 -1.442695, %v30_v5  ;;  %v55_v10 = vadd.f32 %v54_v7, %v52_v6  ;;  %v77_v11 = vmul.f32 %v76_v8, %v24_v0  ;;  %v79_v12 = vstv %s250_s20  ;;  %s350_s24 = sld [smem:[#allocation2 + $0x9]] }
  0x12   :  { %s352_s25 = sld [smem:[#allocation2 + $0xa]]  ;;  %v104_v22 = vstv %s340_s0 }
  0x13   :  { %276 = vpow2.f32 %v245_v9  ;;  %v248_v13 = vmul.f32 -1.442695, %v55_v10  ;;  %v80_v14 = vadd.f32 %v79_v12, %v77_v11  ;;  %s354_s26 = sld [smem:[#allocation2 + $0xb]]  ;;  %v102_v26 = vstv %s342_s1 }
  0x14   :  { %s356_s27 = sld [smem:[#allocation2 + $0x14]]  ;;  %v107_v27 = vstv %s344_s21 }
  0x15   :  { %278 = vpow2.f32 %v248_v13  ;;  %v251_v15 = vmul.f32 -1.442695, %v80_v14  ;;  %s358_s28 = sld [smem:[#allocation2 + $0xc]]  ;;  %v111_v29 = vstv %s346_s22 }
  0x16   :  { %s360_s29 = sld [smem:[#allocation2 + $0xd]]  ;;  %v138_v31 = vstv %s348_s23 }
  0x17   :  { %280 = vpow2.f32 %v251_v15  ;;  %s363_s30 = sld [smem:[#allocation2 + $0xe]]  ;;  %v136_v30 = vstv %s350_s24 }
  0x18   :  { %s367_s3 = sld [smem:[#allocation2 + $0x15]]  ;;  %v141_v32 = vstv %s352_s25 }
  0x19   :  { %v277_v16 = vpop.eup %276  ;;  %s372_s4 = sld [smem:[#allocation2 + $0xf]]  ;;  %v145_v33 = vstv %s354_s26 }
  0x1a   :  { %v34_v17 = vadd.f32 1.0, %v277_v16  ;;  %v173_v35 = vstv %s356_s27  ;;  %s379_s5 = sld [smem:[#allocation2 + $0x10]] }
  0x1b   :  { %v279_v18 = vpop.eup %278  ;;  %v171_v34 = vstv %s358_s28  ;;  %s385_s6 = sld [smem:[#allocation2 + $0x11]] }
  0x1c   :  { %282 = vrcp.f32 %v34_v17  ;;  %v59_v20 = vadd.f32 1.0, %v279_v18  ;;  %v44_v24 = vand.u32 2147483647, %v34_v17  ;;  %v46_v25 = vand.u32 2147483648, %v34_v17 }
  0x1d   :  { %v281_v19 = vpop.eup %280  ;;  %vm40_vm0 = vweird.f32 %v34_v17  ;;  %v176_v38 = vstv %s360_s29  ;;  %v180_v55 = vstv %s363_s30 }
  0x1e   :  { %v84_v21 = vadd.f32 1.0, %v281_v19  ;;  %284 = vrcp.f32 %v59_v20  ;;  %vm381_vm2 = vcmp.eq.f32.partialorder %v44_v24, 8.507059e+37  ;;  %v47_v41 = vor.u32 1.1754944e-38, %v46_v25 }
  0x1f   :  { %v69_v43 = vand.u32 2147483647, %v59_v20  ;;  %vm65_vm3 = vweird.f32 %v59_v20  ;;  %v71_v45 = vand.u32 2147483648, %v59_v20  ;;  %v208_v56 = vstv %s367_s3 }
  0x20   :  { %286 = vrcp.f32 %v84_v21  ;;  %v94_v49 = vand.u32 2147483647, %v84_v21  ;;  %v96_v50 = vand.u32 2147483648, %v84_v21  ;;  %vm90_vm6 = vweird.f32 %v84_v21 }
  0x21   :  { %vm391_vm8 = vcmp.eq.f32.partialorder %v69_v43, 8.507059e+37  ;;  %v72_v59 = vor.u32 1.1754944e-38, %v71_v45  ;;  %v206_v61 = vstv %s372_s4  ;;  %v211_v8 = vstv %s379_s5 }
  0x22   :  { %v283_v23 = vpop.eup %282  ;;  %vm95_vm11 = vcmp.eq.f32.partialorder %v94_v49, 8.507059e+37  ;;  %v97_v1 = vor.u32 1.1754944e-38, %v96_v50  ;;  %v215_v9 = vstv %s385_s6 }
  0x23   :  { %v36_v28 = vmul.f32 %v283_v23, %v34_v17  ;;  %vm41_vm1 = vweird.f32 %v283_v23 }
  0x24   :  { %v285_v36 = vpop.eup %284  ;;  %vm387_vm4 = vmor %vm40_vm0, %vm41_vm1 }
  0x25   :  { %v37_v37 = vsub.f32 1.0, %v36_v28  ;;  %v61_v42 = vmul.f32 %v285_v36, %v59_v20  ;;  %vm66_vm5 = vweird.f32 %v285_v36 }
  0x26   :  { %v287_v39 = vpop.eup %286  ;;  %vm400_vm9 = vmor %vm65_vm3, %vm66_vm5 }
  0x27   :  { %v38_v44 = vmul.f32 %v283_v23, %v37_v37  ;;  %v86_v46 = vmul.f32 %v287_v39, %v84_v21  ;;  %v62_v48 = vsub.f32 1.0, %v61_v42  ;;  %vm91_vm7 = vweird.f32 %v287_v39 }
  0x28   :  { %vm407_vm10 = vmor %vm90_vm6, %vm91_vm7 }
  0x29   :  { %v39_v51 = vadd.f32 %v283_v23, %v38_v44  ;;  %v87_v52 = vsub.f32 1.0, %v86_v46  ;;  %v63_v53 = vmul.f32 %v285_v36, %v62_v48 }
  0x2b   :  { %v43_v57 = vsel %vm387_vm4, %v283_v23, %v39_v51  ;;  %v88_v60 = vmul.f32 %v287_v39, %v87_v52  ;;  %v64_v63 = vadd.f32 %v285_v36, %v63_v53 }
  0x2c   :  { %v48_v62 = vsel %vm381_vm2, %v47_v41, %v43_v57 }
  0x2d   :  { %v89_v2 = vadd.f32 %v287_v39, %v88_v60  ;;  %v103_v3 = vmul.f32 %v102_v26, %v48_v62  ;;  %v137_v4 = vmul.f32 %v136_v30, %v48_v62  ;;  %v172_v5 = vmul.f32 %v171_v34, %v48_v62 }
  0x2e   :  { %v68_v6 = vsel %vm400_vm9, %v285_v36, %v64_v63  ;;  %v207_v7 = vmul.f32 %v206_v61, %v48_v62 }
  0x2f   :  { %v73_v10 = vsel %vm391_vm8, %v72_v59, %v68_v6  ;;  %v93_v11 = vsel %vm407_vm10, %v287_v39, %v89_v2  ;;  %v105_v12 = vadd.f32 %v104_v22, %v103_v3  ;;  %v139_v13 = vadd.f32 %v138_v31, %v137_v4 }
  0x30   :  { %v98_v14 = vsel %vm95_vm11, %v97_v1, %v93_v11  ;;  %v108_v15 = vmul.f32 %v107_v27, %v73_v10  ;;  %v142_v16 = vmul.f32 %v141_v32, %v73_v10  ;;  %v174_v17 = vadd.f32 %v173_v35, %v172_v5 }
  0x31   :  { %v112_v18 = vmul.f32 %v111_v29, %v98_v14  ;;  %v146_v19 = vmul.f32 %v145_v33, %v98_v14  ;;  %v177_v20 = vmul.f32 %v176_v38, %v73_v10  ;;  %v181_v21 = vmul.f32 %v180_v55, %v98_v14 }
  0x32   :  { %v109_v23 = vadd.f32 %v108_v15, %v105_v12  ;;  %v143_v24 = vadd.f32 %v142_v16, %v139_v13  ;;  %v209_v25 = vadd.f32 %v208_v56, %v207_v7  ;;  %v212_v26 = vmul.f32 %v211_v8, %v73_v10 }
  0x33   :  { %v178_v28 = vadd.f32 %v177_v20, %v174_v17  ;;  %v216_v30 = vmul.f32 %v215_v9, %v98_v14 }
  0x34   :  { %v113_v34 = vadd.f32 %v112_v18, %v109_v23  ;;  %v147_v36 = vadd.f32 %v146_v19, %v143_v24  ;;  %v213_v22 = vadd.f32 %v212_v26, %v209_v25 }
  0x35   :  { %v182_v31 = vadd.f32 %v181_v21, %v178_v28 }
  0x36   :  { %v256_v37 = vmul.f32 -1.442695, %v113_v34  ;;  %v261_v39 = vmul.f32 -1.442695, %v147_v36  ;;  %v217_v27 = vadd.f32 %v216_v30, %v213_v22 }
  0x37   :  { %v267_v32 = vmul.f32 -1.442695, %v182_v31 }
  0x38   :  { %288 = vpow2.f32 %v256_v37  ;;  %v273_v35 = vmul.f32 -1.442695, %v217_v27 }
  0x39   :  { %290 = vpow2.f32 %v261_v39 }
  0x3a   :  { %292 = vpow2.f32 %v267_v32 }
  0x3b   :  { %294 = vpow2.f32 %v273_v35 }
  0x3e   :  { %v289_v29 = vpop.eup %288 }
  0x3f   :  { %v291_v33 = vpop.eup %290  ;;  %v117_v38 = vadd.f32 1.0, %v289_v29 }
  0x40   :  { %v293_v40 = vpop.eup %292  ;;  %v151_v41 = vadd.f32 1.0, %v291_v33 }
  0x41   :  { %v295_v42 = vpop.eup %294  ;;  %296 = vrcp.f32 %v117_v38  ;;  %v186_v43 = vadd.f32 1.0, %v293_v40  ;;  %v127_v45 = vand.u32 2147483647, %v117_v38  ;;  %v129_v46 = vand.u32 2147483648, %v117_v38 }
  0x42   :  { %298 = vrcp.f32 %v151_v41  ;;  %v221_v44 = vadd.f32 1.0, %v295_v42  ;;  %v161_v48 = vand.u32 2147483647, %v151_v41  ;;  %v163_v49 = vand.u32 2147483648, %v151_v41 }
  0x43   :  { %300 = vrcp.f32 %v186_v43  ;;  %vm123_vm12 = vweird.f32 %v117_v38  ;;  %vm157_vm13 = vweird.f32 %v151_v41  ;;  %vm425_vm15 = vcmp.eq.f32.partialorder %v127_v45, 8.507059e+37 }
  0x44   :  { %302 = vrcp.f32 %v221_v44  ;;  %v130_v55 = vor.u32 1.1754944e-38, %v129_v46  ;;  %vm429_vm1 = vcmp.eq.f32.partialorder %v161_v48, 8.507059e+37  ;;  %v164_v59 = vor.u32 1.1754944e-38, %v163_v49 }
  0x45   :  { %vm192_vm2 = vweird.f32 %v186_v43  ;;  %v196_v63 = vand.u32 2147483647, %v186_v43  ;;  %v198_v2 = vand.u32 2147483648, %v186_v43  ;;  %vm227_vm4 = vweird.f32 %v221_v44 }
  0x46   :  { %v233_v7 = vand.u32 2147483648, %v221_v44  ;;  %v231_v10 = vand.u32 2147483647, %v221_v44 }
  0x47   :  { %v297_v47 = vpop.eup %296  ;;  %v199_v15 = vor.u32 1.1754944e-38, %v198_v2  ;;  %vm197_vm9 = vcmp.eq.f32.partialorder %v196_v63, 8.507059e+37 }
  0x48   :  { %v299_v50 = vpop.eup %298  ;;  %v119_v51 = vmul.f32 %v297_v47, %v117_v38  ;;  %vm124_vm14 = vweird.f32 %v297_v47  ;;  %v234_v19 = vor.u32 1.1754944e-38, %v233_v7  ;;  %vm232_vm11 = vcmp.eq.f32.partialorder %v231_v10, 8.507059e+37 }
  0x49   :  { %v153_v52 = vmul.f32 %v299_v50, %v151_v41  ;;  %v301_v56 = vpop.eup %300  ;;  %vm158_vm0 = vweird.f32 %v299_v50  ;;  %vm434_vm3 = vmor %vm123_vm12, %vm124_vm14 }
  0x4a   :  { %v120_v53 = vsub.f32 1.0, %v119_v51  ;;  %v303_v60 = vpop.eup %302  ;;  %v188_v62 = vmul.f32 %v301_v56, %v186_v43  ;;  %vm439_vm5 = vmor %vm157_vm13, %vm158_vm0  ;;  %vm193_vm6 = vweird.f32 %v301_v56 }
  0x4b   :  { %v154_v57 = vsub.f32 1.0, %v153_v52  ;;  %v223_v3 = vmul.f32 %v303_v60, %v221_v44  ;;  %vm228_vm7 = vweird.f32 %v303_v60  ;;  %vm194_vm8 = vmor %vm192_vm2, %vm193_vm6 }
  0x4c   :  { %v121_v61 = vmul.f32 %v297_v47, %v120_v53  ;;  %v189_v6 = vsub.f32 1.0, %v188_v62  ;;  %vm229_vm10 = vmor %vm227_vm4, %vm228_vm7 }
  0x4d   :  { %v155_v1 = vmul.f32 %v299_v50, %v154_v57  ;;  %v224_v9 = vsub.f32 1.0, %v223_v3 }
  0x4e   :  { %v122_v4 = vadd.f32 %v297_v47, %v121_v61  ;;  %v190_v12 = vmul.f32 %v301_v56, %v189_v6 }
  0x4f   :  { %v156_v8 = vadd.f32 %v299_v50, %v155_v1  ;;  %v225_v16 = vmul.f32 %v303_v60, %v224_v9 }
  0x50   :  { %v126_v11 = vsel %vm434_vm3, %v297_v47, %v122_v4  ;;  %v191_v18 = vadd.f32 %v301_v56, %v190_v12 }
  0x51   :  { %v131_v13 = vsel %vm425_vm15, %v130_v55, %v126_v11  ;;  %v160_v14 = vsel %vm439_vm5, %v299_v50, %v156_v8  ;;  %v226_v20 = vadd.f32 %v303_v60, %v225_v16 }
  0x52   :  { %133 = vst [vmem:[%s467_s2] sm:$0xff] %v131_v13  ;;  %v165_v17 = vsel %vm429_vm1, %v164_v59, %v160_v14  ;;  %v195_v21 = vsel %vm194_vm8, %v301_v56, %v191_v18 }
  0x53   :  { %262 = vst [vmem:[%s467_s2 + $0x8] sm:$0xff] %v165_v17  ;;  %v200_v23 = vsel %vm197_vm9, %v199_v15, %v195_v21  ;;  %v230_v24 = vsel %vm229_vm10, %v303_v60, %v226_v20 }
  0x54   :  { %268 = vst [vmem:[%s467_s2 + $0x10] sm:$0xff] %v200_v23  ;;  %v235_v25 = vsel %vm232_vm11, %v234_v19, %v230_v24 }
  0x55   :  { %274 = vst [vmem:[%s467_s2 + $0x18] sm:$0xff] %v235_v25 }
  0x56   :  { %243 = vsyncpa [#allocation3], 1 }

</bundles_post_ra>
